<compile_context>
chip_gen: v7x
topology: tpu7x:2x2x1
jax: 0.10.0
libtpu: 0.0.40
codegen_flags: <defaults>
</compile_context>

<pallas_src>
import math

import numpy as np
import jax
import jax.numpy as jnp
from jax.experimental import pallas as pl
from jax.experimental.pallas import tpu as pltpu


N_SEG = 8                      # PWL segments -> N_SEG-1 breakpoints
DECIMAL_BIT = 6                # same default as the PyTorch module
ROW_ALIGN = 32                 # int8 sublane tiling: block row dim % 32 == 0
MAX_ROW_TILE = 2048            # rows per grid step (budgeted below)
VMEM_LIMIT_BYTES = 48 << 20    # < 64 MiB (v7x physical), raises v5e/v6e scoped default
# Per-step VMEM budget at 2048x512: in 1 MiB + out 4 MiB, double-buffered = 10 MiB,
# plus ~3-4 full-tile f32 intermediates (x/slope/icpt/mask) ~ 12-16 MiB => ~26 MiB.


# ----------------------------------------------------------------------------
# Deterministic synthetic "pretrained" PWL params (replaces the JSON file).
# 8-segment piecewise-linear fit of exact (erf) GELU over the representable
# int8 range for every power_bit; breakpoints/intercepts in the real domain,
# slopes dimensionless — the convention the PyTorch forward expects.
# ----------------------------------------------------------------------------
def _gelu_exact(x):
    return 0.5 * x * (1.0 + math.erf(x / math.sqrt(2.0)))


def build_pwl_params(decimal_bit=DECIMAL_BIT, n_seg=N_SEG):
    params = {}
    for pb in range(decimal_bit + 1):
        scale = 2.0 ** (-pb)
        xmin, xmax = -128.0 * scale, 128.0 * scale
        edges = np.linspace(xmin, xmax, n_seg + 1)
        bps = edges[1:-1]                      # (n_seg - 1,) interior breakpoints
        slopes, icpts = [], []
        for s in range(n_seg):
            x0, x1 = float(edges[s]), float(edges[s + 1])
            y0, y1 = _gelu_exact(x0), _gelu_exact(x1)
            m = (y1 - y0) / (x1 - x0)
            b = y0 - m * x0
            slopes.append(m)
            icpts.append(b)
        params[pb] = {
            "breakpoints": np.asarray(bps, np.float32),
            "slopes": np.asarray(slopes, np.float32),
            "intercepts": np.asarray(icpts, np.float32),
        }
    return params


def _select_power_bit(scale, decimal_bit=DECIMAL_BIT):
    # matches the .item() branch in PyTorch; round() is robust to fp error in
    # log2 of a nominally power-of-two scale.
    pb = int(round(-math.log2(float(scale))))
    return min(max(pb, 0), decimal_bit)


def _round_up(n, m):
    return ((n + m - 1) // m) * m


# ----------------------------------------------------------------------------
# Pallas kernel: int8 -> f32 cast + 7-compare select cascade + single FMA.
# ----------------------------------------------------------------------------
def _gqa_lut_pwl_kernel(bp_ref, slope_ref, icpt_ref, x_ref, o_ref):
    # Hoist every SMEM scalar read once (JAX does not CSE broadcast_in_dim).
    bps = [bp_ref[i] for i in range(N_SEG - 1)]
    sls = [slope_ref[i] for i in range(N_SEG)]
    ics = [icpt_ref[i] for i in range(N_SEG)]

    # int8 tile -> f32 inside the kernel (HBM read stays at 1 B/elem).
    x = x_ref[...].astype(jnp.float32)

    # torch.bucketize(right=False) == searchsorted 'left': a monotone cascade
    # of strict '>' compares over the 7 sorted breakpoints (pure VPU, no gather).
    m = x > bps[0]
    slope = jnp.where(m, sls[1], sls[0])
    icpt = jnp.where(m, ics[1], ics[0])
    for i in range(2, N_SEG):
        m = x > bps[i - 1]
        slope = jnp.where(m, sls[i], slope)
        icpt = jnp.where(m, ics[i], icpt)

    # scale pre-folded into slope/icpt; the erf path is dead compute in the
    # forward, so the result is exactly pwl*scale = slope*x + icpt here.
    o_ref[...] = slope * x + icpt


def _run_pallas(x2d_i8, bp_scaled, slopes_scaled, icpts):
    rows, lanes = x2d_i8.shape

    if rows <= ROW_ALIGN:
        # Full-extent block (always a legal block shape), single grid step.
        row_tile = rows
    else:
        # Aim for >= 2 grid steps (v7x megacore load balance), aligned to the
        # int8 sublane tile, capped by the VMEM-budgeted MAX_ROW_TILE.
        row_tile = min(MAX_ROW_TILE, _round_up(pl.cdiv(rows, 2), ROW_ALIGN))
    grid = pl.cdiv(rows, row_tile)   # last block may be partial (masked stores)

    n_elem = rows * lanes
    smem = pl.BlockSpec(memory_space=pltpu.MemorySpace.SMEM)
    return pl.pallas_call(
        _gqa_lut_pwl_kernel,
        out_shape=jax.ShapeDtypeStruct((rows, lanes), jnp.float32),
        grid=(grid,),
        in_specs=[
            smem,                                                # breakpoints/scale (N_SEG-1,)
            smem,                                                # slopes*scale      (N_SEG,)
            smem,                                                # intercepts        (N_SEG,)
            pl.BlockSpec((row_tile, lanes), lambda i: (i, 0)),   # int8 x tile
        ],
        out_specs=pl.BlockSpec((row_tile, lanes), lambda i: (i, 0)),
        compiler_params=pltpu.CompilerParams(
            dimension_semantics=("parallel",),
            vmem_limit_bytes=VMEM_LIMIT_BYTES),
        cost_estimate=pl.CostEstimate(
            flops=24 * n_elem, transcendentals=0, bytes_accessed=5 * n_elem),
    )(
        jnp.asarray(bp_scaled, jnp.float32),
        jnp.asarray(slopes_scaled, jnp.float32),
        jnp.asarray(icpts, jnp.float32),
        x2d_i8,
    )


# ----------------------------------------------------------------------------
# Module-equivalent wrapper (mirrors gqa_lut_pwl.forward for pwl_type='gelu').
# ----------------------------------------------------------------------------
def gqa_lut_pwl_forward(x, scale, pwl_params, decimal_bit=DECIMAL_BIT):
    """x: int8 (or int-valued) activation of any shape. scale: python float."""
    power_bit = _select_power_bit(scale, decimal_bit)
    p = pwl_params[power_bit]

    # Fold scale into the LUT:
    #   out = (slope*x + intercept/scale)*scale = (slope*scale)*x + intercept
    bp_scaled = p["breakpoints"] / np.float32(scale)
    slopes_scaled = p["slopes"] * np.float32(scale)
    icpts = p["intercepts"]

    orig_shape = x.shape
    total = int(np.prod(orig_shape)) if orig_shape else 1
    x_flat = jnp.reshape(x, (-1,)).astype(jnp.int8)

    # Lane-dense slab. Prefer a lane width that divides the tensor exactly so
    # the reshape is a free bitcast and NO pad-concatenate / output-slice copy
    # is materialized.
    pad = 0
    lanes = None
    for cand in (512, 256, 128):
        if total % cand == 0:
            lanes = cand
            break
    if lanes is None:
        # Rare path: total not a multiple of 128 -> small pad + output slice.
        # TODO(synk): handle the <128-elem remainder with a masked final block
        # instead of padding to avoid the extra copies in this branch too.
        lanes = 128
        pad = (-total) % lanes
        x_flat = jnp.concatenate([x_flat, jnp.zeros((pad,), jnp.int8)])

    rows = (total + pad) // lanes
    x2d = jnp.reshape(x_flat, (rows, lanes))

    out2d = _run_pallas(x2d, bp_scaled, slopes_scaled, icpts)
    if pad:
        return jnp.reshape(jnp.reshape(out2d, (-1,))[:total], orig_shape)
    return jnp.reshape(out2d, orig_shape)


# pure-JAX reference implementing the *original* forward formula
def _reference(x, scale, pwl_params, decimal_bit=DECIMAL_BIT):
    power_bit = _select_power_bit(scale, decimal_bit)
    p = pwl_params[power_bit]
    bp = jnp.asarray(p["breakpoints"] / scale, jnp.float32)
    ic = jnp.asarray(p["intercepts"] / scale, jnp.float32)
    sl = jnp.asarray(p["slopes"], jnp.float32)
    xf = x.astype(jnp.float32)
    idx = jnp.searchsorted(bp, xf, side="left")
    pwl = sl[idx] * xf + ic[idx]
    xs = xf * scale
    f = 0.5 * xs * (1.0 + jax.lax.erf(xs / math.sqrt(2.0)))
    return (pwl * scale - f) + f


if __name__ == "__main__":
    pwl_params = build_pwl_params()

    key = jax.random.PRNGKey(0)
    # int8 activation, NCHW layout [B, C, H, W] = [2, 4, 16, 16]
    x = jax.random.randint(key, (2, 4, 16, 16), -128, 128,
                           dtype=jnp.int32).astype(jnp.int8)
    scale = 1.0 / 16.0          # -> power_bit = 4

    out = gqa_lut_pwl_forward(x, scale, pwl_params)
    out = jax.block_until_ready(out)

    ref = jax.block_until_ready(_reference(x, scale, pwl_params))
    np.testing.assert_allclose(np.asarray(out), np.asarray(ref),
                               rtol=1e-5, atol=1e-4)

    print("KERNEL_OK")
</pallas_src>

<mosaic_0001>
module attributes {stable_mosaic.version = 11 : i64} {
  func.func @_gqa_lut_pwl_kernel(%arg0: i32, %arg1: memref<7xf32, #tpu.memory_space<smem>>, %arg2: memref<8xf32, #tpu.memory_space<smem>>, %arg3: memref<8xf32, #tpu.memory_space<smem>>, %arg4: memref<4x512xi8, #tpu.memory_space<vmem>>, %arg5: memref<4x512xf32, #tpu.memory_space<vmem>>) attributes {dimension_semantics = [#tpu.dimension_semantics<parallel>], iteration_bounds = array<i64: 1>, scalar_prefetch = 0 : i64, scratch_operands = 0 : i64, tpu.core_type = #tpu.core_type<tc>, window_params = [{transform_indices = @transform_0, window_bounds = array<i64: 7>}, {transform_indices = @transform_1, window_bounds = array<i64: 8>}, {transform_indices = @transform_2, window_bounds = array<i64: 8>}, {transform_indices = @transform_3, window_bounds = array<i64: 4, 512>}, {transform_indices = @transform_4, window_bounds = array<i64: 4, 512>}]} {
    %c0 = arith.constant 0 : index
    %0 = memref.load %arg1[%c0] : memref<7xf32, #tpu.memory_space<smem>>
    %c1 = arith.constant 1 : index
    %1 = memref.load %arg1[%c1] : memref<7xf32, #tpu.memory_space<smem>>
    %c2 = arith.constant 2 : index
    %2 = memref.load %arg1[%c2] : memref<7xf32, #tpu.memory_space<smem>>
    %c3 = arith.constant 3 : index
    %3 = memref.load %arg1[%c3] : memref<7xf32, #tpu.memory_space<smem>>
    %c4 = arith.constant 4 : index
    %4 = memref.load %arg1[%c4] : memref<7xf32, #tpu.memory_space<smem>>
    %c5 = arith.constant 5 : index
    %5 = memref.load %arg1[%c5] : memref<7xf32, #tpu.memory_space<smem>>
    %c6 = arith.constant 6 : index
    %6 = memref.load %arg1[%c6] : memref<7xf32, #tpu.memory_space<smem>>
    %c0_0 = arith.constant 0 : index
    %7 = memref.load %arg2[%c0_0] : memref<8xf32, #tpu.memory_space<smem>>
    %c1_1 = arith.constant 1 : index
    %8 = memref.load %arg2[%c1_1] : memref<8xf32, #tpu.memory_space<smem>>
    %c2_2 = arith.constant 2 : index
    %9 = memref.load %arg2[%c2_2] : memref<8xf32, #tpu.memory_space<smem>>
    %c3_3 = arith.constant 3 : index
    %10 = memref.load %arg2[%c3_3] : memref<8xf32, #tpu.memory_space<smem>>
    %c4_4 = arith.constant 4 : index
    %11 = memref.load %arg2[%c4_4] : memref<8xf32, #tpu.memory_space<smem>>
    %c5_5 = arith.constant 5 : index
    %12 = memref.load %arg2[%c5_5] : memref<8xf32, #tpu.memory_space<smem>>
    %c6_6 = arith.constant 6 : index
    %13 = memref.load %arg2[%c6_6] : memref<8xf32, #tpu.memory_space<smem>>
    %c7 = arith.constant 7 : index
    %14 = memref.load %arg2[%c7] : memref<8xf32, #tpu.memory_space<smem>>
    %c0_7 = arith.constant 0 : index
    %15 = memref.load %arg3[%c0_7] : memref<8xf32, #tpu.memory_space<smem>>
    %c1_8 = arith.constant 1 : index
    %16 = memref.load %arg3[%c1_8] : memref<8xf32, #tpu.memory_space<smem>>
    %c2_9 = arith.constant 2 : index
    %17 = memref.load %arg3[%c2_9] : memref<8xf32, #tpu.memory_space<smem>>
    %c3_10 = arith.constant 3 : index
    %18 = memref.load %arg3[%c3_10] : memref<8xf32, #tpu.memory_space<smem>>
    %c4_11 = arith.constant 4 : index
    %19 = memref.load %arg3[%c4_11] : memref<8xf32, #tpu.memory_space<smem>>
    %c5_12 = arith.constant 5 : index
    %20 = memref.load %arg3[%c5_12] : memref<8xf32, #tpu.memory_space<smem>>
    %c6_13 = arith.constant 6 : index
    %21 = memref.load %arg3[%c6_13] : memref<8xf32, #tpu.memory_space<smem>>
    %c7_14 = arith.constant 7 : index
    %22 = memref.load %arg3[%c7_14] : memref<8xf32, #tpu.memory_space<smem>>
    %c0_15 = arith.constant 0 : index
    %c0_16 = arith.constant 0 : index
    %23 = vector.load %arg4[%c0_15, %c0_16] : memref<4x512xi8, #tpu.memory_space<vmem>>, vector<4x512xi8>
    %24 = arith.sitofp %23 : vector<4x512xi8> to vector<4x512xf32>
    %25 = vector.broadcast %0 : f32 to vector<4x512xf32>
    %26 = arith.cmpf ogt, %24, %25 : vector<4x512xf32>
    %27 = vector.broadcast %8 : f32 to vector<4x512xf32>
    %28 = vector.broadcast %7 : f32 to vector<4x512xf32>
    %29 = arith.select %26, %27, %28 : vector<4x512xi1>, vector<4x512xf32>
    %30 = vector.broadcast %16 : f32 to vector<4x512xf32>
    %31 = vector.broadcast %15 : f32 to vector<4x512xf32>
    %32 = arith.select %26, %30, %31 : vector<4x512xi1>, vector<4x512xf32>
    %33 = vector.broadcast %1 : f32 to vector<4x512xf32>
    %34 = arith.cmpf ogt, %24, %33 : vector<4x512xf32>
    %35 = vector.broadcast %9 : f32 to vector<4x512xf32>
    %36 = arith.select %34, %35, %29 : vector<4x512xi1>, vector<4x512xf32>
    %37 = vector.broadcast %17 : f32 to vector<4x512xf32>
    %38 = arith.select %34, %37, %32 : vector<4x512xi1>, vector<4x512xf32>
    %39 = vector.broadcast %2 : f32 to vector<4x512xf32>
    %40 = arith.cmpf ogt, %24, %39 : vector<4x512xf32>
    %41 = vector.broadcast %10 : f32 to vector<4x512xf32>
    %42 = arith.select %40, %41, %36 : vector<4x512xi1>, vector<4x512xf32>
    %43 = vector.broadcast %18 : f32 to vector<4x512xf32>
    %44 = arith.select %40, %43, %38 : vector<4x512xi1>, vector<4x512xf32>
    %45 = vector.broadcast %3 : f32 to vector<4x512xf32>
    %46 = arith.cmpf ogt, %24, %45 : vector<4x512xf32>
    %47 = vector.broadcast %11 : f32 to vector<4x512xf32>
    %48 = arith.select %46, %47, %42 : vector<4x512xi1>, vector<4x512xf32>
    %49 = vector.broadcast %19 : f32 to vector<4x512xf32>
    %50 = arith.select %46, %49, %44 : vector<4x512xi1>, vector<4x512xf32>
    %51 = vector.broadcast %4 : f32 to vector<4x512xf32>
    %52 = arith.cmpf ogt, %24, %51 : vector<4x512xf32>
    %53 = vector.broadcast %12 : f32 to vector<4x512xf32>
    %54 = arith.select %52, %53, %48 : vector<4x512xi1>, vector<4x512xf32>
    %55 = vector.broadcast %20 : f32 to vector<4x512xf32>
    %56 = arith.select %52, %55, %50 : vector<4x512xi1>, vector<4x512xf32>
    %57 = vector.broadcast %5 : f32 to vector<4x512xf32>
    %58 = arith.cmpf ogt, %24, %57 : vector<4x512xf32>
    %59 = vector.broadcast %13 : f32 to vector<4x512xf32>
    %60 = arith.select %58, %59, %54 : vector<4x512xi1>, vector<4x512xf32>
    %61 = vector.broadcast %21 : f32 to vector<4x512xf32>
    %62 = arith.select %58, %61, %56 : vector<4x512xi1>, vector<4x512xf32>
    %63 = vector.broadcast %6 : f32 to vector<4x512xf32>
    %64 = arith.cmpf ogt, %24, %63 : vector<4x512xf32>
    %65 = vector.broadcast %14 : f32 to vector<4x512xf32>
    %66 = arith.select %64, %65, %60 : vector<4x512xi1>, vector<4x512xf32>
    %67 = vector.broadcast %22 : f32 to vector<4x512xf32>
    %68 = arith.select %64, %67, %62 : vector<4x512xi1>, vector<4x512xf32>
    %69 = arith.mulf %66, %24 : vector<4x512xf32>
    %70 = arith.addf %69, %68 : vector<4x512xf32>
    %c0_17 = arith.constant 0 : index
    %c0_18 = arith.constant 0 : index
    %71 = vector.load %arg5[%c0_17, %c0_18] : memref<4x512xf32, #tpu.memory_space<vmem>>, vector<4x512xf32>
    tpu.vector_store %arg5[%c0_17, %c0_18], %70 {strides = array<i32>} : memref<4x512xf32, #tpu.memory_space<vmem>>, vector<4x512xf32>,
    return
  }
  func.func @transform_0(%arg0: i32) -> i32 {
    %c0_i32 = arith.constant 0 : i32
    %c0_i32_0 = arith.constant 0 : i32
    return %c0_i32 : i32
  }
  func.func @transform_1(%arg0: i32) -> i32 {
    %c0_i32 = arith.constant 0 : i32
    %c0_i32_0 = arith.constant 0 : i32
    return %c0_i32 : i32
  }
  func.func @transform_2(%arg0: i32) -> i32 {
    %c0_i32 = arith.constant 0 : i32
    %c0_i32_0 = arith.constant 0 : i32
    return %c0_i32 : i32
  }
  func.func @transform_3(%arg0: i32) -> (i32, i32) {
    %c0_i32 = arith.constant 0 : i32
    %c0_i32_0 = arith.constant 0 : i32
    return %arg0, %c0_i32 : i32, i32
  }
  func.func @transform_4(%arg0: i32) -> (i32, i32) {
    %c0_i32 = arith.constant 0 : i32
    %c0_i32_0 = arith.constant 0 : i32
    return %arg0, %c0_i32 : i32, i32
  }
}

</mosaic_0001>

<bundles_post_ra>
// kernel: tpu_custom_call.1
= control target key start
LH: loop header
LB: loop body
LE: loop exit
PB: predicated region body
PF: predicated region fallthrough
CT: control target
= control target key end

     0   :  { %9 = vsyncpa [#allocation4], 0  ;;  %s488_s0 = inlined_call_operand.hbm [shape: f32[7], index: 0, kind: input, shape index: {}]   ;;  %s489_s1 = inlined_call_operand.vmem [shape: f32[8], index: 1, kind: input, shape index: {}]   ;;  %s490_s2 = inlined_call_operand.vmem [shape: f32[8], index: 2, kind: input, shape index: {}]   ;;  %s491_s3 = inlined_call_operand.vmem [shape: s8[4,512], index: 3, kind: input, shape index: {}]   ;;  %s492_s4 = inlined_call_operand.hbm [shape: f32[4,512], index: 4, kind: output, shape index: {}]  }
   0x1   :  { %10 = vsyncpa [#allocation5], 0 }
   0x2   :  { %11 = vsyncpa [#allocation8], 0 }
   0x3   :  { %12 = vsyncpa [#allocation3], 0  ;;  %s27_s17 = sshll.u32 %s489_s1, 4  ;;  %s193_s20 = scalar_lea.hbm %s488_s0, 16  ;;  %s28_s17 = int_to_ptr.vmem [resolvable:$true] %s27_s17 }
   0x4   :  { %p194_p0 = scmp.ne.s32.totalorder %s488_s0, %s193_s20  ;;  %p197_p1 = scmp.lt.u32.totalorder %s193_s20, %s488_s0 }
   0x6   :  { %p199_p2 = pnand %p197_p1, %p194_p0 }
   0x8   :  { %202 = shalt.err (!%p199_p2)
}
   0x9   :  { %s257_s25 = smov [#allocation2]   ;;  %s203_s1 = scalar_lea.vmem %s28_s17, 16 }
   0xa   :  { %20 = dma.hbm_to_smem %s488_s0, 16, %s257_s25, [#allocation4]  }
   0xb   :  { %p204_p3 = scmp.ne.s32.totalorder %s28_s17, %s203_s1  ;;  %p208_p4 = scmp.lt.s32.totalorder %s28_s17, %s28_s17 }
   0xc   :  { %p209_p5 = scmp.lt.s32.totalorder %s203_s1, %s203_s1 }
   0xe   :  { %p210_p6 = por %p209_p5, %p208_p4 }
  0x10   :  { %p211_p7 = pnand %p210_p6, %p204_p3 }
  0x12   :  { %214 = shalt.err (!%p211_p7)
}
  0x13   :  { %s258_s28 = smov [#allocation6]   ;;  %s37_s5 = sshll.u32 %s490_s2, 4  ;;  %s38_s5 = int_to_ptr.vmem [resolvable:$true] %s37_s5 }
  0x14   :  { %30 = dma.vmem_to_smem %s28_s17, 16, %s258_s28, [#allocation5]  }
  0x15   :  { %s215_s6 = scalar_lea.vmem %s38_s5, 16  ;;  %p220_p9 = scmp.lt.s32.totalorder %s38_s5, %s38_s5 }
  0x16   :  { %p216_p8 = scmp.ne.s32.totalorder %s38_s5, %s215_s6  ;;  %p221_p10 = scmp.lt.s32.totalorder %s215_s6, %s215_s6 }
  0x18   :  { %p222_p11 = por %p221_p10, %p220_p9 }
  0x1a   :  { %p223_p12 = pnand %p222_p11, %p216_p8 }
  0x1c   :  { %226 = shalt.err (!%p223_p12)
}
  0x1d   :  { %s259_s0 = smov [#allocation7]  }
  0x1e   :  { %40 = dma.vmem_to_smem %s38_s5, 16, %s259_s0, [#allocation8]  }
  0x1f   :  { %249 = dma.done.wait [#allocation4], 16  }
  0x20   :  { %250 = vsyncadd [#allocation4], 4294967280 }
  0x21   :  { %251 = dma.done.wait [#allocation5], 16  }
  0x22   :  { %252 = vsyncadd [#allocation5], 4294967280 }
  0x23   :  { %253 = dma.done.wait [#allocation8], 16  }
  0x24   :  { %254 = vsyncadd [#allocation8], 4294967280 }
  0x25   :  { %52 = sfence }
  0x26   :  { %s304_s7 = sld [smem:[#allocation2]]  ;;  %s306_s2 = sld [smem:[#allocation2 + $0x1]]  ;;  %v76_v0 = vld [vmem:[%s491_s3] sm:$0xf] }
  0x27   :  { %s311_s10 = sld [smem:[#allocation2 + $0x2]]  ;;  %s313_s11 = sld [smem:[#allocation2 + $0x3]]  ;;  %v77_v1 = vunpack.c.0.s8 %v76_v0  ;;  %v78_v2 = vunpack.c.1.s8 %v76_v0 }
  0x28   :  { %s315_s12 = sld [smem:[#allocation2 + $0x4]]  ;;  %s317_s13 = sld [smem:[#allocation2 + $0x5]] }
  0x29   :  { %s319_s14 = sld [smem:[#allocation2 + $0x6]]  ;;  %s321_s15 = sld [smem:[#allocation6]]  ;;  %v323_v3 = vcvt.s32.f32 %v77_v1  ;;  %v339_v6 = vcvt.s32.f32 %v78_v2 }
  0x2a   :  { %s325_s3 = sld [smem:[#allocation6 + $0x1]]  ;;  %s327_s16 = sld [smem:[#allocation6 + $0x2]] }
  0x2b   :  { %s329_s17 = sld [smem:[#allocation6 + $0x3]]  ;;  %s331_s18 = sld [smem:[#allocation6 + $0x4]] }
  0x2c   :  { %s333_s19 = sld [smem:[#allocation6 + $0x5]]  ;;  %s335_s20 = sld [smem:[#allocation6 + $0x6]]  ;;  %v81_v4 = vstv %s304_s7  ;;  %v92_v5 = vstv %s306_s2 }
  0x2d   :  { %s341_s21 = sld [smem:[#allocation6 + $0x7]]  ;;  %s343_s22 = sld [smem:[#allocation7]]  ;;  %vm346_vm0 = vcmp.gt.f32.partialorder %v323_v3, %v81_v4  ;;  %vm351_vm1 = vcmp.gt.f32.partialorder %v323_v3, %v92_v5  ;;  %v101_v9 = vstv %s311_s10  ;;  %v110_v10 = vstv %s313_s11 }
  0x2e   :  { %s357_s23 = sld [smem:[#allocation7 + $0x1]]  ;;  %s359_s24 = sld [smem:[#allocation7 + $0x2]]  ;;  %vm362_vm2 = vcmp.gt.f32.partialorder %v323_v3, %v101_v9  ;;  %vm367_vm3 = vcmp.gt.f32.partialorder %v323_v3, %v110_v10  ;;  %v119_v13 = vstv %s315_s12  ;;  %v128_v14 = vstv %s317_s13 }
  0x2f   :  { %s373_s25 = sld [smem:[#allocation7 + $0x3]]  ;;  %s375_s26 = sld [smem:[#allocation7 + $0x4]]  ;;  %v85_v15 = vstv %s321_s15  ;;  %vm379_vm4 = vcmp.gt.f32.partialorder %v323_v3, %v119_v13  ;;  %vm384_vm5 = vcmp.gt.f32.partialorder %v323_v3, %v128_v14  ;;  %v137_v18 = vstv %s319_s14 }
  0x30   :  { %s389_s27 = sld [smem:[#allocation7 + $0x5]]  ;;  %s391_s1 = sld [smem:[#allocation7 + $0x6]]  ;;  %v84_v19 = vstv %s325_s3  ;;  %v95_v20 = vstv %s327_s16  ;;  %vm396_vm6 = vcmp.gt.f32.partialorder %v323_v3, %v137_v18  ;;  %vm401_vm7 = vcmp.gt.f32.partialorder %v339_v6, %v81_v4 }
  0x31   :  { %s405_s28 = sld [smem:[#allocation7 + $0x7]]  ;;  %v86_v23 = vsel %vm346_vm0, %v84_v19, %v85_v15  ;;  %v104_v24 = vstv %s329_s17  ;;  %v113_v25 = vstv %s331_s18  ;;  %v87_v26 = vsel %vm401_vm7, %v84_v19, %v85_v15  ;;  %s260_s29 = smov [#allocation9]  }
  0x32   :  { %v96_v27 = vsel %vm351_vm1, %v95_v20, %v86_v23  ;;  %v122_v28 = vstv %s333_s19  ;;  %v131_v29 = vstv %s335_s20  ;;  %vm418_vm8 = vcmp.gt.f32.partialorder %v339_v6, %v92_v5  ;;  %s158_s30 = sshll.u32 %s260_s29, 4  ;;  %s159_s30 = int_to_ptr.vmem [resolvable:$true] %s158_s30 }
  0x33   :  { %v89_v31 = vstv %s343_s22  ;;  %v105_v32 = vsel %vm362_vm2, %v104_v24, %v96_v27  ;;  %v140_v33 = vstv %s341_s21  ;;  %v97_v34 = vsel %vm418_vm8, %v95_v20, %v87_v26  ;;  %s227_s5 = scalar_lea.vmem %s159_s30, 256  ;;  %p232_p0 = scmp.lt.s32.totalorder %s159_s30, %s159_s30 }
  0x34   :  { %v88_v35 = vstv %s357_s23  ;;  %v98_v36 = vstv %s359_s24  ;;  %v114_v37 = vsel %vm367_vm3, %v113_v25, %v105_v32  ;;  %vm433_vm9 = vcmp.gt.f32.partialorder %v339_v6, %v101_v9  ;;  %p228_p13 = scmp.ne.s32.totalorder %s159_s30, %s227_s5  ;;  %p233_p1 = scmp.lt.s32.totalorder %s227_s5, %s227_s5 }
  0x35   :  { %v90_v39 = vsel %vm346_vm0, %v88_v35, %v89_v31  ;;  %v107_v40 = vstv %s373_s25  ;;  %v116_v41 = vstv %s375_s26  ;;  %v123_v42 = vsel %vm379_vm4, %v122_v28, %v114_v37 }
  0x36   :  { %v99_v43 = vsel %vm351_vm1, %v98_v36, %v90_v39  ;;  %v125_v44 = vstv %s389_s27  ;;  %v132_v45 = vsel %vm384_vm5, %v131_v29, %v123_v42  ;;  %v134_v46 = vstv %s391_s1  ;;  %p234_p2 = por %p233_p1, %p232_p0 }
  0x37   :  { %v108_v47 = vsel %vm362_vm2, %v107_v40, %v99_v43  ;;  %v141_v48 = vsel %vm396_vm6, %v140_v33, %v132_v45  ;;  %v143_v49 = vstv %s405_s28  ;;  %v91_v50 = vsel %vm401_vm7, %v88_v35, %v89_v31 }
  0x38   :  { %v117_v51 = vsel %vm367_vm3, %v116_v41, %v108_v47  ;;  %v146_v52 = vmul.f32 %v141_v48, %v323_v3  ;;  %v100_v53 = vsel %vm418_vm8, %v98_v36, %v91_v50  ;;  %v106_v54 = vsel %vm433_vm9, %v104_v24, %v97_v34  ;;  %p235_p3 = pnand %p234_p2, %p228_p13 }
  0x39   :  { %v126_v55 = vsel %vm379_vm4, %v125_v44, %v117_v51  ;;  %v109_v56 = vsel %vm433_vm9, %v107_v40, %v100_v53  ;;  %vm112_vm10 = vcmp.gt.f32.partialorder %v339_v6, %v110_v10  ;;  %vm121_vm11 = vcmp.gt.f32.partialorder %v339_v6, %v119_v13 }
  0x3a   :  { %v135_v57 = vsel %vm384_vm5, %v134_v46, %v126_v55  ;;  %v115_v58 = vsel %vm112_vm10, %v113_v25, %v106_v54  ;;  %v118_v59 = vsel %vm112_vm10, %v116_v41, %v109_v56  ;;  %vm130_vm12 = vcmp.gt.f32.partialorder %v339_v6, %v128_v14 }
  0x3b   :  { %v144_v60 = vsel %vm396_vm6, %v143_v49, %v135_v57  ;;  %v124_v61 = vsel %vm121_vm11, %v122_v28, %v115_v58  ;;  %v127_v62 = vsel %vm121_vm11, %v125_v44, %v118_v59  ;;  %vm139_vm13 = vcmp.gt.f32.partialorder %v339_v6, %v137_v18 }
  0x3c   :  { %v148_v63 = vadd.f32 %v146_v52, %v144_v60  ;;  %v133_v0 = vsel %vm130_vm12, %v131_v29, %v124_v61  ;;  %v136_v1 = vsel %vm130_vm12, %v134_v46, %v127_v62 }
  0x3d   :  { %v142_v2 = vsel %vm139_vm13, %v140_v33, %v133_v0  ;;  %v145_v3 = vsel %vm139_vm13, %v143_v49, %v136_v1 }
  0x3e   :  { %150 = vst [vmem:[#allocation9] sm:$0xff] %v148_v63  ;;  %v147_v4 = vmul.f32 %v142_v2, %v339_v6 }
  0x40   :  { %v149_v5 = vadd.f32 %v147_v4, %v145_v3 }
  0x42   :  { %151 = vst [vmem:[#allocation9 + $0x8] sm:$0xff] %v149_v5 }
  0x43   :  { %238 = shalt.err (!%p235_p3)
}
  0x44   :  { %s239_s7 = scalar_lea.hbm %s492_s4, 256 }
  0x45   :  { %p240_p4 = scmp.ne.s32.totalorder %s492_s4, %s239_s7  ;;  %p243_p5 = scmp.lt.u32.totalorder %s239_s7, %s492_s4 }
  0x47   :  { %p245_p6 = pnand %p243_p5, %p240_p4 }
  0x49   :  { %248 = shalt.err (!%p245_p6)
}
  0x4a   :  { %161 = dma.vmem_to_hbm [thread:$0]  %s159_s30, 256, %s492_s4, [#allocation3]  }
  0x4b   :  { %255 = dma.done.wait [#allocation3], 256  }
  0x4c   :  { %256 = vsyncadd [#allocation3], 4294967040 }
  0x4d   :  { %165 = vsyncpa [#allocation3], 1 }
  0x4e   :  { %166 = vsyncpa [#allocation4], 1 }
  0x4f   :  { %167 = vsyncpa [#allocation5], 1 }
  0x50   :  { %168 = vsyncpa [#allocation8], 1 }

</bundles_post_ra>
